<compile_context>
chip_gen: v7x
topology: tpu7x:2x2x1
jax: 0.10.0
libtpu: 0.0.40
codegen_flags: <defaults>
</compile_context>

<pallas_src>
import numpy as np
import jax
import jax.numpy as jnp
from jax.experimental import pallas as pl
from jax.experimental.pallas import tpu as pltpu


# ----------------------------------------------------------------------------
# Host-side (numpy) construction of the spatial operator matrices.
# ----------------------------------------------------------------------------
def adaptive_pool_matrix_1d(n_in, n_out):
    """P (n_out x n_in) such that P @ v == adaptive_avg_pool1d(v, n_out)."""
    P = np.zeros((n_out, n_in), dtype=np.float32)
    for i in range(n_out):
        start = (i * n_in) // n_out
        end = -((-(i + 1) * n_in) // n_out)  # ceil((i+1)*n_in / n_out)
        P[i, start:end] = 1.0 / (end - start)
    return P


def bilinear_matrix_1d(n_in, n_out, align_corners):
    """W (n_out x n_in) such that W @ v == bilinear-resize of v to n_out."""
    W = np.zeros((n_out, n_in), dtype=np.float32)
    if n_in == 1:
        W[:, 0] = 1.0
        return W
    dst = np.arange(n_out, dtype=np.float64)
    if align_corners and n_out > 1:
        src = dst * (n_in - 1) / (n_out - 1)
    else:
        src = (dst + 0.5) * n_in / n_out - 0.5
        src = np.clip(src, 0.0, n_in - 1)
    i0 = np.clip(np.floor(src).astype(np.int64), 0, n_in - 1)
    i1 = np.minimum(i0 + 1, n_in - 1)
    frac = (src - i0).astype(np.float32)
    for j in range(n_out):
        W[j, i0[j]] += 1.0 - frac[j]
        W[j, i1[j]] += frac[j]
    return W


def spatial_op_2d(mat_h, mat_w):
    """Kron of per-axis operators acting on row-major flattened (h, w)."""
    return np.kron(mat_h, mat_w).astype(np.float32)


def _build_operators(pool_scales, H, W, align_corners, sublane=8):
    """Per-scale operators, each zero-padded to a multiple of `sublane` columns.

    Returns:
      AT (HW, S_pad): concatenated adaptive-pool operators, transposed.
      BT (S_pad, HW): concatenated composed resize operators (B2 @ B1)^T.
      offs, ss_valid, ss_padded: per-scale padded offset / valid size / padded size.
    """
    H2, W2 = H // 2, W // 2
    HW = H * W
    AT_blocks, BT_blocks = [], []
    offs, ss_valid, ss_padded = [], [], []
    off = 0
    for s in pool_scales:
        A = spatial_op_2d(adaptive_pool_matrix_1d(H, s),
                          adaptive_pool_matrix_1d(W, s))                  # (ss, HW)
        B1 = spatial_op_2d(bilinear_matrix_1d(s, H2, align_corners),
                           bilinear_matrix_1d(s, W2, align_corners))       # (H2*W2, ss)
        B2 = spatial_op_2d(bilinear_matrix_1d(H2, H, align_corners),
                           bilinear_matrix_1d(W2, W, align_corners))       # (HW, H2*W2)
        # TODO(synk): `revolution` acts between B1 and B2 in the reference; it is
        # treated as identity, which makes the host-side fusion B = B2 @ B1 exact.
        B = (B2 @ B1).astype(np.float32)                                   # (HW, ss)
        ss = s * s
        ssp = -(-ss // sublane) * sublane                                  # pad to 8
        AT_b = np.zeros((HW, ssp), dtype=np.float32); AT_b[:, :ss] = A.T
        BT_b = np.zeros((ssp, HW), dtype=np.float32); BT_b[:ss, :] = B.T
        AT_blocks.append(AT_b)
        BT_blocks.append(BT_b)
        offs.append(off); ss_valid.append(ss); ss_padded.append(ssp)
        off += ssp
    AT = np.concatenate(AT_blocks, axis=1)                                 # (HW, S_pad)
    BT = np.concatenate(BT_blocks, axis=0)                                 # (S_pad, HW)
    return AT, BT, tuple(offs), tuple(ss_valid), tuple(ss_padded)


def _pick_hw_tile(HW):
    """Largest 128-multiple tile that still gives >= 2 grid steps along HW."""
    if HW % 128 != 0:
        return HW
    for t in (512, 256, 128):
        if HW % t == 0 and HW // t >= 2:
            return t
    return HW


# ----------------------------------------------------------------------------
# Fused Pallas kernel: all scales, channel-major, HW-tiled grid.
# ----------------------------------------------------------------------------
def ppm_forward(x_nchw, params, pool_scales, align_corners=False,
                compute_dtype=jnp.bfloat16, out_dtype=jnp.float32):
    """x_nchw: (N, Cin, H, W) f32; params: list of (Wc (Cin,C), bc (C,)) per scale.
       Returns list of (N, C, H, W) `out_dtype` outputs, one per pool scale.
       Pass out_dtype=jnp.bfloat16 to halve output HBM traffic when the consumer
       computes in bf16 anyway."""
    N, Cin, H, W = x_nchw.shape
    HW = H * W
    C = params[0][0].shape[1]
    ns = len(pool_scales)
    CC = ns * C

    AT_np, BT_np, offs, ss_valid, _ = _build_operators(pool_scales, H, W, align_corners)
    S_pad = AT_np.shape[1]

    t_hw = _pick_hw_tile(HW)
    n_hw = HW // t_hw

    # Block-diagonal validity mask: row-block si only sees its own valid columns.
    mask_np = np.zeros((CC, S_pad), dtype=np.float32)
    for si in range(ns):
        mask_np[si * C:(si + 1) * C, offs[si]:offs[si] + ss_valid[si]] = 1.0

    # Operands (bf16 for the MXU, f32 accumulation inside the kernel).
    AT = jnp.asarray(AT_np, dtype=compute_dtype)                           # (HW, S_pad)
    BT = jnp.asarray(BT_np, dtype=compute_dtype)                           # (S_pad, HW)
    W_stk = jnp.concatenate([Wc.T for Wc, _ in params], axis=0).astype(compute_dtype)   # (CC, Cin)
    b_stk = jnp.concatenate([bc.reshape(C, 1) for _, bc in params], axis=0).astype(jnp.float32)  # (CC, 1)
    mask = jnp.asarray(mask_np, dtype=jnp.float32)                         # (CC, S_pad)

    # Channel-major layout, original dtype (cast to bf16 happens in-kernel).
    x_cm = x_nchw.reshape(N, Cin, HW)                                      # (N, Cin, HW)

    def kernel(x_ref, AT_ref, W_ref, b_ref, m_ref, BT_ref, *rest):
        o_refs = rest[:ns]
        conv_ref = rest[ns]                                                # (CC, S_pad) bf16 scratch

        # Pool + 1x1 conv + bias + ReLU: only at the first HW tile of each batch
        # element; result persists in VMEM scratch across the HW sweep.
        @pl.when(pl.program_id(1) == 0)
        def _():
            xb = x_ref[...].astype(compute_dtype)                          # (Cin, HW)
            pooled = jnp.dot(xb, AT_ref[...],
                             preferred_element_type=jnp.float32)           # (Cin, S_pad) f32
            conv = jnp.dot(W_ref[...], pooled.astype(compute_dtype),
                           preferred_element_type=jnp.float32)             # (CC, S_pad) f32
            conv = jnp.maximum(conv + b_ref[...], 0.0) * m_ref[...]        # bias+ReLU+block-diag mask
            conv_ref[...] = conv.astype(compute_dtype)

        # TODO(synk): `revolution` (identity) would act between the two bilinear
        # resizes; they are folded into the composed operator BT = (B2 @ B1)^T.
        out_all = jnp.dot(conv_ref[...], BT_ref[...],
                          preferred_element_type=jnp.float32)              # (CC, t_hw) f32
        for si in range(ns):
            o_refs[si][...] = out_all[si * C:(si + 1) * C, :].astype(out_dtype)

    flops = int(N * (2 * Cin * HW * S_pad + 2 * CC * Cin * S_pad + 2 * CC * S_pad * HW))
    out_itemsize = jnp.dtype(out_dtype).itemsize
    bytes_acc = int(N * Cin * HW * x_cm.dtype.itemsize
                    + ns * N * C * HW * out_itemsize
                    + (AT.size + BT.size + W_stk.size) * 2
                    + (b_stk.size + mask.size) * 4)

    # Note: AT/W/b/mask/BT are grid-invariant; pipeline_mode=pl.Buffered(1) could
    # drop their second VMEM buffer, kept default here for maximum compatibility.
    outs = pl.pallas_call(
        kernel,
        out_shape=tuple(jax.ShapeDtypeStruct((N, C, HW), out_dtype) for _ in range(ns)),
        grid=(N, n_hw),
        in_specs=[
            pl.BlockSpec((None, Cin, HW), lambda n, h: (n, 0, 0)),         # x: once per batch elem
            pl.BlockSpec((HW, S_pad), lambda n, h: (0, 0)),                # A^T (grid-invariant)
            pl.BlockSpec((CC, Cin), lambda n, h: (0, 0)),                  # stacked conv weights
            pl.BlockSpec((CC, 1), lambda n, h: (0, 0)),                    # stacked conv bias
            pl.BlockSpec((CC, S_pad), lambda n, h: (0, 0)),                # block-diagonal mask
            pl.BlockSpec((S_pad, t_hw), lambda n, h: (0, h)),              # composed B^T, HW-tiled
        ],
        out_specs=tuple(pl.BlockSpec((None, C, t_hw), lambda n, h: (n, 0, h))
                        for _ in range(ns)),
        scratch_shapes=[pltpu.VMEM((CC, S_pad), compute_dtype)],
        compiler_params=pltpu.CompilerParams(
            dimension_semantics=("parallel", "arbitrary"),
            vmem_limit_bytes=64 * 1024 * 1024),
        cost_estimate=pl.CostEstimate(flops=flops, transcendentals=0,
                                      bytes_accessed=bytes_acc),
    )(x_cm, AT, W_stk, b_stk, mask, BT)

    # Pure (free) reshapes back to NCHW; no host-side slicing/copies.
    return [o.reshape(N, C, H, W) for o in outs]


# ----------------------------------------------------------------------------
# Pure-JAX reference (same operator matrices, same bf16/f32 mixed precision).
# ----------------------------------------------------------------------------
def ppm_reference(x_nchw, params, pool_scales, align_corners=False,
                  compute_dtype=jnp.bfloat16):
    N, Cin, H, W = x_nchw.shape
    HW = H * W
    C = params[0][0].shape[1]
    AT_np, BT_np, offs, ss_valid, _ = _build_operators(pool_scales, H, W, align_corners)
    AT = jnp.asarray(AT_np, dtype=compute_dtype)
    BT = jnp.asarray(BT_np, dtype=compute_dtype)
    x_cm = x_nchw.reshape(N, Cin, HW).astype(compute_dtype)

    pooled = jnp.einsum("nch,hs->ncs", x_cm, AT,
                        preferred_element_type=jnp.float32)                # (N, Cin, S_pad)
    pooled = pooled.astype(compute_dtype)
    outs = []
    for si, (Wc, bc) in enumerate(params):
        off, ssv = offs[si], ss_valid[si]
        WT = Wc.T.astype(compute_dtype)                                    # (C, Cin)
        p = pooled[:, :, off:off + ssv]                                    # (N, Cin, ss)
        conv = jnp.einsum("dc,ncs->nds", WT, p,
                          preferred_element_type=jnp.float32)
        conv = jnp.maximum(conv + bc.reshape(1, C, 1), 0.0)
        out = jnp.einsum("nds,sh->ndh", conv.astype(compute_dtype),
                         BT[off:off + ssv, :],
                         preferred_element_type=jnp.float32)               # (N, C, HW)
        outs.append(out.reshape(N, C, H, W))
    return outs


if __name__ == "__main__":
    pool_scales = (1, 2, 3, 6)
    N, Cin, H, W = 2, 4, 16, 16
    C = 16
    align_corners = False

    key = jax.random.PRNGKey(0)
    kx, kp = jax.random.split(key)
    x = jax.random.normal(kx, (N, Cin, H, W), dtype=jnp.float32)

    # Deterministic per-scale 1x1-conv params (weight (Cin, C), bias (C,)).
    params = []
    for _ in pool_scales:
        kw, kb, kp = jax.random.split(kp, 3)
        Wc = 0.1 * jax.random.normal(kw, (Cin, C), dtype=jnp.float32)
        bc = 0.1 * jax.random.normal(kb, (C,), dtype=jnp.float32)
        params.append((Wc, bc))

    outs = ppm_forward(x, params, pool_scales, align_corners)
    outs = [jax.block_until_ready(o) for o in outs]

    refs = ppm_reference(x, params, pool_scales, align_corners)
    for o, r in zip(outs, refs):
        assert o.shape == (N, C, H, W)
        np.testing.assert_allclose(np.asarray(o), np.asarray(r),
                                   rtol=1e-3, atol=1e-3)

    print("KERNEL_OK")
</pallas_src>

<mosaic_0001>
module attributes {stable_mosaic.version = 11 : i64} {
  func.func @kernel(%arg0: i32, %arg1: i32, %arg2: memref<1x4x256xf32, #tpu.memory_space<vmem>>, %arg3: memref<256x72xbf16, #tpu.memory_space<vmem>>, %arg4: memref<64x4xbf16, #tpu.memory_space<vmem>>, %arg5: memref<64x1xf32, #tpu.memory_space<vmem>>, %arg6: memref<64x72xf32, #tpu.memory_space<vmem>>, %arg7: memref<72x128xbf16, #tpu.memory_space<vmem>>, %arg8: memref<1x16x128xf32, #tpu.memory_space<vmem>>, %arg9: memref<1x16x128xf32, #tpu.memory_space<vmem>>, %arg10: memref<1x16x128xf32, #tpu.memory_space<vmem>>, %arg11: memref<1x16x128xf32, #tpu.memory_space<vmem>>, %arg12: memref<64x72xbf16, #tpu.memory_space<vmem>>) attributes {dimension_semantics = [#tpu.dimension_semantics<parallel>, #tpu.dimension_semantics<arbitrary>], iteration_bounds = array<i64: 2, 2>, scalar_prefetch = 0 : i64, scratch_operands = 1 : i64, tpu.core_type = #tpu.core_type<tc>, window_params = [{transform_indices = @transform_0, window_bounds = array<i64: 1, 4, 256>}, {pipeline_mode = #tpu.pipeline_mode<synchronous>, transform_indices = @transform_1, window_bounds = array<i64: 256, 72>}, {pipeline_mode = #tpu.pipeline_mode<synchronous>, transform_indices = @transform_2, window_bounds = array<i64: 64, 4>}, {pipeline_mode = #tpu.pipeline_mode<synchronous>, transform_indices = @transform_3, window_bounds = array<i64: 64, 1>}, {pipeline_mode = #tpu.pipeline_mode<synchronous>, transform_indices = @transform_4, window_bounds = array<i64: 64, 72>}, {transform_indices = @transform_5, window_bounds = array<i64: 72, 128>}, {transform_indices = @transform_6, window_bounds = array<i64: 1, 16, 128>}, {transform_indices = @transform_7, window_bounds = array<i64: 1, 16, 128>}, {transform_indices = @transform_8, window_bounds = array<i64: 1, 16, 128>}, {transform_indices = @transform_9, window_bounds = array<i64: 1, 16, 128>}]} {
    %c0_i32 = arith.constant 0 : i32
    %0 = arith.cmpi eq, %arg1, %c0_i32 : i32
    %1 = arith.extui %0 : i1 to i32
    %c0_i32_0 = arith.constant 0 : i32
    %2 = arith.cmpi ne, %1, %c0_i32_0 : i32
    scf.if %2 {
      %c0_16 = arith.constant 0 : index
      %c0_17 = arith.constant 0 : index
      %c0_18 = arith.constant 0 : index
      %22 = vector.load %arg2[%c0_16, %c0_17, %c0_18] : memref<1x4x256xf32, #tpu.memory_space<vmem>>, vector<1x4x256xf32>
      %23 = vector.shape_cast %22 : vector<1x4x256xf32> to vector<4x256xf32>
      %24 = arith.truncf %23 : vector<4x256xf32> to vector<4x256xbf16>
      %c0_19 = arith.constant 0 : index
      %c0_20 = arith.constant 0 : index
      %25 = vector.load %arg3[%c0_19, %c0_20] : memref<256x72xbf16, #tpu.memory_space<vmem>>, vector<256x72xbf16>
      %cst_21 = arith.constant dense<0.000000e+00> : vector<4x72xf32>
      %26 = tpu.matmul %24, %25, %cst_21 {dimension_numbers = #tpu.dot_dimension_numbers<[1], [0], [0], [1], [0, 0, 1, 1], [], []>} : vector<4x256xbf16>, vector<256x72xbf16>, vector<4x72xf32> -> vector<4x72xf32>
      %c0_22 = arith.constant 0 : index
      %c0_23 = arith.constant 0 : index
      %27 = vector.load %arg4[%c0_22, %c0_23] : memref<64x4xbf16, #tpu.memory_space<vmem>>, vector<64x4xbf16>
      %28 = arith.truncf %26 : vector<4x72xf32> to vector<4x72xbf16>
      %cst_24 = arith.constant dense<0.000000e+00> : vector<64x72xf32>
      %29 = tpu.matmul %27, %28, %cst_24 {dimension_numbers = #tpu.dot_dimension_numbers<[1], [0], [0], [1], [0, 0, 1, 1], [], []>} : vector<64x4xbf16>, vector<4x72xbf16>, vector<64x72xf32> -> vector<64x72xf32>
      %c0_25 = arith.constant 0 : index
      %c0_26 = arith.constant 0 : index
      %30 = vector.load %arg5[%c0_25, %c0_26] : memref<64x1xf32, #tpu.memory_space<vmem>>, vector<64x1xf32>
      %31 = vector.broadcast %30 : vector<64x1xf32> to vector<64x72xf32>
      %32 = arith.addf %29, %31 : vector<64x72xf32>
      %cst_27 = arith.constant 0.000000e+00 : f32
      %33 = vector.broadcast %cst_27 : f32 to vector<64x72xf32>
      %34 = arith.maximumf %32, %33 : vector<64x72xf32>
      %c0_28 = arith.constant 0 : index
      %c0_29 = arith.constant 0 : index
      %35 = vector.load %arg6[%c0_28, %c0_29] : memref<64x72xf32, #tpu.memory_space<vmem>>, vector<64x72xf32>
      %36 = arith.mulf %34, %35 : vector<64x72xf32>
      %37 = arith.truncf %36 : vector<64x72xf32> to vector<64x72xbf16>
      %c0_30 = arith.constant 0 : index
      %c0_31 = arith.constant 0 : index
      %38 = vector.load %arg12[%c0_30, %c0_31] : memref<64x72xbf16, #tpu.memory_space<vmem>>, vector<64x72xbf16>
      tpu.vector_store %arg12[%c0_30, %c0_31], %37 {strides = array<i32>} : memref<64x72xbf16, #tpu.memory_space<vmem>>, vector<64x72xbf16>,
    } else {
    }
    %c0 = arith.constant 0 : index
    %c0_1 = arith.constant 0 : index
    %3 = vector.load %arg12[%c0, %c0_1] : memref<64x72xbf16, #tpu.memory_space<vmem>>, vector<64x72xbf16>
    %c0_2 = arith.constant 0 : index
    %c0_3 = arith.constant 0 : index
    %4 = vector.load %arg7[%c0_2, %c0_3] : memref<72x128xbf16, #tpu.memory_space<vmem>>, vector<72x128xbf16>
    %cst = arith.constant dense<0.000000e+00> : vector<64x128xf32>
    %5 = tpu.matmul %3, %4, %cst {dimension_numbers = #tpu.dot_dimension_numbers<[1], [0], [0], [1], [0, 0, 1, 1], [], []>} : vector<64x72xbf16>, vector<72x128xbf16>, vector<64x128xf32> -> vector<64x128xf32>
    %6 = vector.extract_strided_slice %5 {offsets = [0, 0], sizes = [16, 128], strides = [1, 1]} : vector<64x128xf32> to vector<16x128xf32>
    %c0_4 = arith.constant 0 : index
    %c0_5 = arith.constant 0 : index
    %c0_6 = arith.constant 0 : index
    %7 = vector.load %arg8[%c0_4, %c0_5, %c0_6] : memref<1x16x128xf32, #tpu.memory_space<vmem>>, vector<1x16x128xf32>
    %8 = vector.shape_cast %7 : vector<1x16x128xf32> to vector<16x128xf32>
    %9 = vector.shape_cast %6 : vector<16x128xf32> to vector<1x16x128xf32>
    tpu.vector_store %arg8[%c0_4, %c0_5, %c0_6], %9 {strides = array<i32>} : memref<1x16x128xf32, #tpu.memory_space<vmem>>, vector<1x16x128xf32>,
    %10 = vector.extract_strided_slice %5 {offsets = [16, 0], sizes = [16, 128], strides = [1, 1]} : vector<64x128xf32> to vector<16x128xf32>
    %c0_7 = arith.constant 0 : index
    %c0_8 = arith.constant 0 : index
    %c0_9 = arith.constant 0 : index
    %11 = vector.load %arg9[%c0_7, %c0_8, %c0_9] : memref<1x16x128xf32, #tpu.memory_space<vmem>>, vector<1x16x128xf32>
    %12 = vector.shape_cast %11 : vector<1x16x128xf32> to vector<16x128xf32>
    %13 = vector.shape_cast %10 : vector<16x128xf32> to vector<1x16x128xf32>
    tpu.vector_store %arg9[%c0_7, %c0_8, %c0_9], %13 {strides = array<i32>} : memref<1x16x128xf32, #tpu.memory_space<vmem>>, vector<1x16x128xf32>,
    %14 = vector.extract_strided_slice %5 {offsets = [32, 0], sizes = [16, 128], strides = [1, 1]} : vector<64x128xf32> to vector<16x128xf32>
    %c0_10 = arith.constant 0 : index
    %c0_11 = arith.constant 0 : index
    %c0_12 = arith.constant 0 : index
    %15 = vector.load %arg10[%c0_10, %c0_11, %c0_12] : memref<1x16x128xf32, #tpu.memory_space<vmem>>, vector<1x16x128xf32>
    %16 = vector.shape_cast %15 : vector<1x16x128xf32> to vector<16x128xf32>
    %17 = vector.shape_cast %14 : vector<16x128xf32> to vector<1x16x128xf32>
    tpu.vector_store %arg10[%c0_10, %c0_11, %c0_12], %17 {strides = array<i32>} : memref<1x16x128xf32, #tpu.memory_space<vmem>>, vector<1x16x128xf32>,
    %18 = vector.extract_strided_slice %5 {offsets = [48, 0], sizes = [16, 128], strides = [1, 1]} : vector<64x128xf32> to vector<16x128xf32>
    %c0_13 = arith.constant 0 : index
    %c0_14 = arith.constant 0 : index
    %c0_15 = arith.constant 0 : index
    %19 = vector.load %arg11[%c0_13, %c0_14, %c0_15] : memref<1x16x128xf32, #tpu.memory_space<vmem>>, vector<1x16x128xf32>
    %20 = vector.shape_cast %19 : vector<1x16x128xf32> to vector<16x128xf32>
    %21 = vector.shape_cast %18 : vector<16x128xf32> to vector<1x16x128xf32>
    tpu.vector_store %arg11[%c0_13, %c0_14, %c0_15], %21 {strides = array<i32>} : memref<1x16x128xf32, #tpu.memory_space<vmem>>, vector<1x16x128xf32>,
    return
  }
  func.func @transform_0(%arg0: i32, %arg1: i32) -> (i32, i32, i32) {
    %c0_i32 = arith.constant 0 : i32
    %c0_i32_0 = arith.constant 0 : i32
    %c0_i32_1 = arith.constant 0 : i32
    return %arg0, %c0_i32, %c0_i32_0 : i32, i32, i32
  }
  func.func @transform_1(%arg0: i32, %arg1: i32) -> (i32, i32) {
    %c0_i32 = arith.constant 0 : i32
    %c0_i32_0 = arith.constant 0 : i32
    %c0_i32_1 = arith.constant 0 : i32
    return %c0_i32, %c0_i32_0 : i32, i32
  }
  func.func @transform_2(%arg0: i32, %arg1: i32) -> (i32, i32) {
    %c0_i32 = arith.constant 0 : i32
    %c0_i32_0 = arith.constant 0 : i32
    %c0_i32_1 = arith.constant 0 : i32
    return %c0_i32, %c0_i32_0 : i32, i32
  }
  func.func @transform_3(%arg0: i32, %arg1: i32) -> (i32, i32) {
    %c0_i32 = arith.constant 0 : i32
    %c0_i32_0 = arith.constant 0 : i32
    %c0_i32_1 = arith.constant 0 : i32
    return %c0_i32, %c0_i32_0 : i32, i32
  }
  func.func @transform_4(%arg0: i32, %arg1: i32) -> (i32, i32) {
    %c0_i32 = arith.constant 0 : i32
    %c0_i32_0 = arith.constant 0 : i32
    %c0_i32_1 = arith.constant 0 : i32
    return %c0_i32, %c0_i32_0 : i32, i32
  }
  func.func @transform_5(%arg0: i32, %arg1: i32) -> (i32, i32) {
    %c0_i32 = arith.constant 0 : i32
    %c0_i32_0 = arith.constant 0 : i32
    return %c0_i32, %arg1 : i32, i32
  }
  func.func @transform_6(%arg0: i32, %arg1: i32) -> (i32, i32, i32) {
    %c0_i32 = arith.constant 0 : i32
    %c0_i32_0 = arith.constant 0 : i32
    return %arg0, %c0_i32, %arg1 : i32, i32, i32
  }
  func.func @transform_7(%arg0: i32, %arg1: i32) -> (i32, i32, i32) {
    %c0_i32 = arith.constant 0 : i32
    %c0_i32_0 = arith.constant 0 : i32
    return %arg0, %c0_i32, %arg1 : i32, i32, i32
  }
  func.func @transform_8(%arg0: i32, %arg1: i32) -> (i32, i32, i32) {
    %c0_i32 = arith.constant 0 : i32
    %c0_i32_0 = arith.constant 0 : i32
    return %arg0, %c0_i32, %arg1 : i32, i32, i32
  }
  func.func @transform_9(%arg0: i32, %arg1: i32) -> (i32, i32, i32) {
    %c0_i32 = arith.constant 0 : i32
    %c0_i32_0 = arith.constant 0 : i32
    return %arg0, %c0_i32, %arg1 : i32, i32, i32
  }
}

</mosaic_0001>

<bundles_post_ra>
// kernel: tpu_custom_call.1
= control target key start
LH: loop header
LB: loop body
LE: loop exit
PB: predicated region body
PF: predicated region fallthrough
CT: control target
= control target key end

     0   :  { %s2799_s0 = inlined_call_operand.hbm [shape: f32[2,4,256], index: 0, kind: input, shape index: {}]   ;;  %s2800_s1 = inlined_call_operand.hbm [shape: bf16[256,72], index: 1, kind: input, shape index: {}]   ;;  %s2801_s2 = inlined_call_operand.hbm [shape: bf16[64,4], index: 2, kind: input, shape index: {}]   ;;  %s2802_s3 = inlined_call_operand.hbm [shape: f32[64,1], index: 3, kind: input, shape index: {}]   ;;  %s2803_s4 = inlined_call_operand.hbm [shape: f32[64,72], index: 4, kind: input, shape index: {}]   ;;  %s2804_s5 = inlined_call_operand.hbm [shape: bf16[72,256], index: 5, kind: input, shape index: {}]   ;;  %s2805_s6 = inlined_call_operand.hbm [shape: f32[2,16,256], index: 6, kind: output, shape index: {0}]   ;;  %s2806_s7 = inlined_call_operand.hbm [shape: f32[2,16,256], index: 7, kind: output, shape index: {1}]   ;;  %s2807_s8 = inlined_call_operand.hbm [shape: f32[2,16,256], index: 8, kind: output, shape index: {2}]   ;;  %s2808_s9 = inlined_call_operand.hbm [shape: f32[2,16,256], index: 9, kind: output, shape index: {3}]  }
   0x1   :  { %2837 = sst [smem:[#allocation42_spill]] %s2799_s0 }
   0x2   :  { %2838 = sst [smem:[#allocation43_spill]] %s2800_s1 }
   0x3   :  { %2839 = sst [smem:[#allocation44_spill]] %s2801_s2 }
   0x4   :  { %2840 = sst [smem:[#allocation45_spill]] %s2802_s3 }
   0x5   :  { %2841 = sst [smem:[#allocation46_spill]] %s2803_s4 }
   0x6   :  { %2842 = sst [smem:[#allocation47_spill]] %s2804_s5 }
   0x7   :  { %2843 = sst [smem:[#allocation48_spill]] %s2805_s6 }
   0x8   :  { %2844 = sst [smem:[#allocation49_spill]] %s2806_s7 }
   0x9   :  { %2845 = sst [smem:[#allocation50_spill]] %s2807_s8 }
   0xa   :  { %2846 = sst [smem:[#allocation51_spill]] %s2808_s9 }
   0xb   :  { %15 = vsyncpa [#allocation4], 0 }
   0xc   :  { %17 = vsyncpa [#allocation4 + $0x1], 0 }
   0xd   :  { %18 = vsyncpa [#allocation7], 0 }
   0xe   :  { %19 = vsyncpa [#allocation10], 0 }
   0xf   :  { %20 = vsyncpa [#allocation13], 0 }
  0x10   :  { %22 = vsyncpa [#allocation13 + $0x1], 0 }
  0x11   :  { %23 = vsyncpa [#allocation5], 0 }
  0x12   :  { %25 = vsyncpa [#allocation5 + $0x1], 0 }
  0x13   :  { %26 = vsyncpa [#allocation16], 0 }
  0x14   :  { %28 = vsyncpa [#allocation16 + $0x1], 0 }
  0x15   :  { %29 = vsyncpa [#allocation19], 0 }
  0x16   :  { %31 = vsyncpa [#allocation19 + $0x1], 0  ;;  %s2187_s30 = smov 0   ;;  %s2189_s10 = smov 0  }
  0x17   :  { %s2191_s11 = smov 0   ;;  %s2193_s12 = smov 0  }
  0x18   :  { %s2195_s13 = smov 0   ;;  %s2197_s14 = smov 0  }
  0x19   :  { %s2199_s15 = smov 0   ;;  %s2201_s16 = smov 0  }
  0x1a   :  { %s2203_s17 = smov 0   ;;  %s2205_s18 = smov 0  }
  0x1b   :  { %s2207_s19 = smov 0   ;;  %s2209_s20 = smov 0  }
  0x1c   :  { %s2211_s21 = smov 0   ;;  %s2213_s22 = smov 0  }
  0x1d LB: > { %2847 = sst [smem:[#allocation27_spill]] %s2065_s30  ;;  %s2258_s23 = sadd.s32 4294967295, %s2117_s22   ;;  %s2117_s22 = sphi %s2213_s22, %s37_s22   ;;  %s2113_s21 = sphi %s2211_s21, %s2922_s21   ;;  %s2109_s20 = sphi %s2209_s20, %s2921_s20   ;;  %s2105_s19 = sphi %s2207_s19, %s2920_s19   ;;  %s2101_s18 = sphi %s2205_s18, %s2919_s18   ;;  %s2097_s17 = sphi %s2203_s17, %s2918_s17   ;;  %s2093_s16 = sphi %s2201_s16, %s2917_s16   ;;  %s2089_s15 = sphi %s2199_s15, %s2916_s15   ;;  %s2085_s14 = sphi %s2197_s14, %s2925_s14   ;;  %s2081_s13 = sphi %s2195_s13, %s2924_s13   ;;  %s2077_s12 = sphi %s2193_s12, %s2923_s12   ;;  %s2073_s11 = sphi %s2191_s11, %s2914_s11   ;;  %s2069_s10 = sphi %s2189_s10, %s2913_s10   ;;  %s2065_s30 = sphi %s2187_s30, %s2912_s30  }
  0x1e   : > { %2848 = sst [smem:[#allocation28_spill]] %s2069_s10  ;;  %p1324_p0 = scmp.ge.s32.totalorder %s2117_s22, 1 }
  0x1f   : > { %2849 = sst [smem:[#allocation29_spill]] %s2073_s11  ;;  %p2813_p1 = scmp.eq.s32.totalorder %s2258_s23, 0 }
  0x20   : > { %2850 = sst [smem:[#allocation30_spill]] %s2093_s16  ;;  %p302_p3 = scmp.lt.s32.totalorder %s2117_s22, 5 }
  0x21   : > { %2851 = sst [smem:[#allocation31_spill]] %s2097_s17  ;;  %s2119_s25 = smov [#allocation6]  }
  0x22   : > { %2852 = sst [smem:[#allocation32_spill]] %s2101_s18  ;;  %p2264_p4 = pnand %p1324_p0, %p302_p3 }
  0x23   : > { %2853 = sst [smem:[#allocation33_spill]] %s2105_s19  ;;  %s314_s26 = sshll.u32 %s2119_s25, 4  ;;  %s315_s26 = int_to_ptr.vmem [resolvable:$true] %s314_s26 }
  0x24   : > { %2854 = sst [smem:[#allocation34_spill]] %s2109_s20  ;;  %p1500_p5 = pneg %p2264_p4 }
  0x25   : > { %2855 = sst [smem:[#allocation35_spill]] %s2113_s21  ;;  %s2120_s28 = smov [#allocation9]  }
  0x26   : > { %s2856_s24 = scalar_select %p2264_p4, 1, 0 }
  0x27   : > { %p2272_p6 = pnand %p1500_p5, %p2813_p1  ;;  %s340_s29 = sshll.u32 %s2120_s28, 4  ;;  %s2276_s29 = int_to_ptr.vmem [resolvable:$true] %s340_s29 }
  0x28   : > { %2857 = sst [smem:[#allocation36_spill]] %s2856_s24  ;;  %s2859_s1 = sld [smem:[#allocation43_spill]] }
  0x29   : > { %p2286_p8 = pneg %p2272_p6 }
  0x2e   : > { %s1695_s6 = scalar_lea.hbm %s2859_s1, 2048 }
  0x2f   : > { %p1696_p7 = scmp.ne.s32.totalorder %s2859_s1, %s1695_s6  ;;  %p1702_p11 = scmp.lt.u32.totalorder %s1695_s6, %s2859_s1 }
  0x31   : > { %p1698_p9 = pnand %p2286_p8, %p1696_p7 }
  0x33   : > { %p1699_p10 = pneg %p1698_p9 }
  0x35   : > { %p1704_p12 = pnand %p1702_p11, %p1699_p10 }
  0x37   : > { %1707 = shalt.err (!%p1704_p12)
}
  0x38   : > { %s1708_s8 = scalar_lea.vmem %s315_s26, 2048  ;;  %p1716_p5 = scmp.lt.s32.totalorder %s315_s26, %s315_s26 }
  0x39   : > { %p1709_p13 = scmp.ne.s32.totalorder %s315_s26, %s1708_s8  ;;  %p1717_p2 = scmp.lt.s32.totalorder %s1708_s8, %s1708_s8 }
  0x3b   : > { %p1711_p0 = pnand %p1709_p13, %p2286_p8  ;;  %p1718_p1 = por %p1717_p2, %p1716_p5 }
  0x3d   : > { %p1712_p3 = pneg %p1711_p0 }
  0x3f   : > { %p1719_p4 = pnand %p1718_p1, %p1712_p3 }
  0x41   : > { %1722 = shalt.err (!%p1719_p4)
}
  0x42   : > { %s2818_s7 = smov 64   ;;  %s2820_s9 = smov 4  }
  0x43   : > { %1503 = dma.hbm_to_vmem [thread:$0]  (!%p2272_p6), %s2859_s1, 2048, %s315_s26, [#allocation7], %s2818_s7, %s2818_s7, %s2820_s9  }
  0x44   : > { %s2861_s3 = sld [smem:[#allocation45_spill]] }
  0x4a   : > { %s1723_s24 = scalar_lea.hbm %s2861_s3, 1024 }
  0x4b   : > { %p1724_p1 = scmp.ne.s32.totalorder %s2861_s3, %s1723_s24  ;;  %p1730_p7 = scmp.lt.u32.totalorder %s1723_s24, %s2861_s3 }
  0x4d   : > { %p1726_p2 = pnand %p1724_p1, %p2286_p8 }
  0x4f   : > { %p1727_p4 = pneg %p1726_p2 }
  0x51   : > { %p1732_p9 = pnand %p1730_p7, %p1727_p4 }
  0x53   : > { %1735 = shalt.err (!%p1732_p9)
}
  0x54   : > { %s1736_s26 = scalar_lea.vmem %s2276_s29, 1024  ;;  %p1744_p13 = scmp.lt.s32.totalorder %s2276_s29, %s2276_s29 }
  0x55   : > { %p1737_p10 = scmp.ne.s32.totalorder %s2276_s29, %s1736_s26  ;;  %p1745_p0 = scmp.lt.s32.totalorder %s1736_s26, %s1736_s26 }
  0x57   : > { %p1739_p11 = pnand %p1737_p10, %p2286_p8  ;;  %p1746_p3 = por %p1745_p0, %p1744_p13 }
  0x59   : > { %p1740_p12 = pneg %p1739_p11 }
  0x5b   : > { %p1747_p5 = pnand %p1746_p3, %p1740_p12 }
  0x5d   : > { %1750 = shalt.err (!%p1747_p5)
}
  0x5e   : > { %s2824_s5 = smov 128   ;;  %s2124_s0 = smov 8  }
  0x5f   : > { %1509 = dma.hbm_to_vmem [thread:$0]  (!%p2272_p6), %s2861_s3, 1024, %s2276_s29, [#allocation10], %s2824_s5, %s2824_s5, %s2124_s0  }
  0x60   : > { %s2125_s6 = smov [#allocation8]   ;;  %s2126_s19 = smov [#allocation11]  }
  0x61   : > { %s327_s18 = sshll.u32 %s2125_s6, 4  ;;  %s353_s28 = sshll.u32 %s2126_s19, 4  ;;  %s328_s18 = int_to_ptr.vmem [resolvable:$true] %s327_s18  ;;  %s354_s28 = int_to_ptr.vmem [resolvable:$true] %s353_s28 }
  0x62   : > { %s2862_s2 = sld [smem:[#allocation44_spill]] }
  0x68   : > { %s1751_s7 = scalar_lea.hbm %s2862_s2, 512 }
  0x69   : > { %p1752_p1 = scmp.ne.s32.totalorder %s2862_s2, %s1751_s7  ;;  %p1758_p7 = scmp.lt.u32.totalorder %s1751_s7, %s2862_s2 }
  0x6b   : > { %p1754_p2 = pnand %p1752_p1, %p2286_p8 }
  0x6d   : > { %p1755_p4 = pneg %p1754_p2 }
  0x6f   : > { %p1760_p9 = pnand %p1758_p7, %p1755_p4 }
  0x71   : > { %1763 = shalt.err (!%p1760_p9)
}
  0x72   : > { %s1764_s29 = scalar_lea.vmem %s328_s18, 512  ;;  %p1772_p13 = scmp.lt.s32.totalorder %s328_s18, %s328_s18 }
  0x73   : > { %p1765_p10 = scmp.ne.s32.totalorder %s328_s18, %s1764_s29  ;;  %p1773_p0 = scmp.lt.s32.totalorder %s1764_s29, %s1764_s29 }
  0x75   : > { %p1767_p11 = pnand %p1765_p10, %p2286_p8  ;;  %p1774_p3 = por %p1773_p0, %p1772_p13 }
  0x77   : > { %p1768_p12 = pneg %p1767_p11 }
  0x79   : > { %p1775_p5 = pnand %p1774_p3, %p1768_p12 }
  0x7b   : > { %1778 = shalt.err (!%p1775_p5)
}
  0x7c   : > { %s2863_s1 = smov 4   ;;  %s2864_s9 = smov 64  }
  0x7d   : > { %1506 = dma.hbm_to_vmem [thread:$0]  (!%p2272_p6), %s2862_s2, 512, %s328_s18, [#allocation7], %s2864_s9, %s2864_s9, %s2863_s1  }
  0x7e   : > { %s2865_s4 = sld [smem:[#allocation46_spill]] }
  0x84   : > { %s1779_s24 = scalar_lea.hbm %s2865_s4, 1024 }
  0x85   : > { %p1780_p1 = scmp.ne.s32.totalorder %s2865_s4, %s1779_s24  ;;  %p1786_p7 = scmp.lt.u32.totalorder %s1779_s24, %s2865_s4 }
  0x87   : > { %p1782_p2 = pnand %p1780_p1, %p2286_p8 }
  0x89   : > { %p1783_p4 = pneg %p1782_p2 }
  0x8b   : > { %p1788_p9 = pnand %p1786_p7, %p1783_p4 }
  0x8d   : > { %1791 = shalt.err (!%p1788_p9)
}
  0x8e   : > { %s1792_s29 = scalar_lea.vmem %s354_s28, 1024  ;;  %p1800_p13 = scmp.lt.s32.totalorder %s354_s28, %s354_s28 }
  0x8f   : > { %p1793_p10 = scmp.ne.s32.totalorder %s354_s28, %s1792_s29  ;;  %p1801_p0 = scmp.lt.s32.totalorder %s1792_s29, %s1792_s29 }
  0x91   : > { %p1795_p11 = pnand %p1793_p10, %p2286_p8  ;;  %p1802_p3 = por %p1801_p0, %p1800_p13 }
  0x93   : > { %p1796_p12 = pneg %p1795_p11 }
  0x95   : > { %p1803_p5 = pnand %p1802_p3, %p1796_p12 }
  0x97   : > { %1806 = shalt.err (!%p1803_p5)
}
  0x98   : > { %1512 = dma.hbm_to_vmem [thread:$0]  (!%p2272_p6), %s2865_s4, 1024, %s354_s28, [#allocation10], %s2824_s5, %s2824_s5, %s2124_s0  }
  0x99   : > { %s2825_s27 = sadd.s32 4294967294, %s2117_s22   ;;  %s46_s25 = sadd.s32 1, %s2109_s20 }
  0x9a   : > { %s49_s11 = sadd.s32 1, %s2113_s21  ;;  %p47_p8 = scmp.ge.s32.totalorder %s46_s25, 2 }
  0x9b   : > { %s56_s7 = sadd.s32 1, %s2097_s17  ;;  %p63_p1 = scmp.ne.s32.totalorder %s2097_s17, %s2093_s16 }
  0x9c   : > { %p64_p2 = scmp.eq.s32.totalorder %s2117_s22, 0  ;;  %s2927_s25 = smov (%p47_p8, %s46_s25), 0 }
  0x9d   : > { %2866 = sst [smem:[#allocation37_spill]] %s2927_s25  ;;  %s2929_s11 = smov (!%p47_p8, %s49_s11), %s2113_s21 }
  0x9e   : > { %p2385_p6 = por %p64_p2, %p63_p1  ;;  %p69_p4 = scmp.ne.s32.totalorder %s2093_s16, %s2089_s15 }
  0x9f   : > { %p51_p7 = scmp.ge.s32.totalorder %s2929_s11, 2  ;;  %s2868_s28 = sld [smem:[#allocation29_spill]] }
  0xa0   : > { %s163_s30 = ssub.s32 %s2109_s20, %s2927_s25  ;;  %p2869_p9 = scmp.eq.s32.totalorder %s2258_s23, 0 }
  0xa1   : > { %s2870_s24 = sld [smem:[#allocation28_spill]]  ;;  %s2872_s19 = sld [smem:[#allocation27_spill]] }
  0xa2   : > { %p2395_p10 = por %p2869_p9, %p69_p4  ;;  %p164_p11 = scmp.eq.s32.totalorder %s163_s30, 0 }
  0xa3   : > { %s2931_s11 = smov (%p51_p7, %s2929_s11), 0  ;;  %s166_s8 = sadd.s32 1, %s2085_s14 }
  0xa4   : > { %s2871_s6 = scalar_select %p2395_p10, 1, 0 }
  0xa5   : > { %2873 = sst [smem:[#allocation38_spill]] %s2931_s11  ;;  %p173_p12 = scmp.ne.s32.totalorder %s2085_s14, %s2081_s13 }
  0xa6   : > { %s53_s15 = ssub.s32 %s2113_s21, %s2931_s11  ;;  %p179_p13 = scmp.ne.s32.totalorder %s2081_s13, %s2077_s12 }
  0xa7   : > { %p54_p0 = scmp.eq.s32.totalorder %s53_s15, 0  ;;  %p2410_p3 = por %p173_p12, %p64_p2 }
  0xa8   : > { %s2415_s29 = scalar_select %p164_p11, %s2085_s14, %s166_s8  }
  0xa9   : > { %s2418_s18 = scalar_select %p54_p0, %s2097_s17, %s56_s7  }
  0xaa   : > { %2875 = sst [smem:[#allocation39_spill]] %s2415_s29  ;;  %p2877_p5 = pmov %p2869_p9 }
  0xab   : > { %2876 = sst [smem:[#allocation40_spill]] %s2418_s18  ;;  %s191_s5 = sor.u32 %s163_s30, %s53_s15 }
  0xac   : > { %p2422_p8 = por %p179_p13, %p2877_p5  ;;  %p192_p1 = scmp.eq.s32.totalorder %s191_s5, 0 }
  0xad   : > { %s194_s12 = sadd.s32 1, %s2868_s28  ;;  %p204_p4 = scmp.ne.s32.totalorder %s2868_s28, %s2870_s24 }
  0xae   : > { %s2878_s10 = scalar_select %p2422_p8, 1, 0 }
  0xaf   : > { %p210_p2 = scmp.ne.s32.totalorder %s2870_s24, %s2872_s19  ;;  %s2933_s28 = smov (!%p192_p1, %s2868_s28), %s194_s12 }
  0xb0   : > { %2879 = sst [smem:[#allocation41_spill]] %s2933_s28  ;;  %p2880_p7 = scmp.eq.s32.totalorder %s2258_s23, 3 }
  0xb1   : > { %p211_p11 = scmp.eq.s32.totalorder %s2825_s27, 3  ;;  %p1537_p12 = scmp.lt.s32.totalorder %s2117_s22, 4 }
  0xb2   : > { %p2436_p9 = por %p2880_p7, %p204_p4  ;;  %s367_s7 = sand.u32 1, %s2097_s17  }
  0xb3   : > { %p2444_p13 = por %p211_p11, %p210_p2  ;;  %s1330_s5 = sshll.u32 %s367_s7, 3 }
  0xb4   : > { %s2881_s8 = scalar_select %p2436_p9, 1, 0 }
  0xb5   : > { %s2882_s30 = scalar_select %p2444_p13, 1, 0 }
  0xb6   : > { %s1392_s15 = sshll.u32 %s2113_s21, 7  ;;  %s2883_s24 = sld [smem:[#allocation42_spill]] }
  0xb7   : > { %s371_s12 = scalar_lea.vmem [#allocation3], %s1330_s5  ;;  %p2456_p0 = pnand %p1537_p12, %p2385_p6 }
  0xb8   : > { %s379_s4 = sshll.u32 %s371_s12, 4  ;;  %p2464_p5 = pnand %p1537_p12, %p2410_p3  ;;  %s2460_s4 = int_to_ptr.vmem [resolvable:$true] %s379_s4 }
  0xb9   : > { %s386_s3 = sand.u32 1, %s2085_s14   ;;  %p1809_p4 = pneg %p2456_p0 }
  0xbc   : > { %s2452_s19 = scalar_lea.hbm %s2883_s24, %s1392_s15  ;;  %s368_s15 = scalar_lea.sflag [#allocation4], %s367_s7 }
  0xbd   : > { %s1807_s11 = scalar_lea.hbm %s2452_s19, 128  ;;  %s1812_s12 = scalar_lea.hbm %s2883_s24, 256 }
  0xbe   : > { %p1808_p1 = scmp.ne.s32.totalorder %s2452_s19, %s1807_s11  ;;  %p1813_p3 = scmp.lt.u32.totalorder %s2452_s19, %s2883_s24 }
  0xbf   : > { %p1814_p7 = scmp.lt.u32.totalorder %s1812_s12, %s1807_s11  ;;  %p1816_p12 = scmp.lt.u32.totalorder %s1807_s11, %s2452_s19 }
  0xc0   : > { %p1810_p6 = pnand %p1809_p4, %p1808_p1 }
  0xc1   : > { %p1815_p11 = por %p1814_p7, %p1813_p3 }
  0xc2   : > { %p1811_p2 = pneg %p1810_p6 }
  0xc3   : > { %p1817_p13 = por %p1816_p12, %p1815_p11 }
  0xc5   : > { %p1818_p9 = pnand %p1817_p13, %p1811_p2 }
  0xc7   : > { %1821 = shalt.err (!%p1818_p9)
}
  0xc8   : > { %s1822_s7 = scalar_lea.vmem %s2460_s4, 128  ;;  %s2127_s0 = smov [#allocation3]  }
  0xc9   : > { %p1823_p1 = scmp.ne.s32.totalorder %s2460_s4, %s1822_s7  ;;  %s1827_s5 = sshll.u32 %s2127_s0, 4  ;;  %s1828_s5 = int_to_ptr.vmem [resolvable:$false] %s1827_s5 }
  0xca   : > { %s1829_s25 = scalar_lea.vmem %s1828_s5, 256  ;;  %p1830_p10 = scmp.lt.s32.totalorder %s2460_s4, %s1828_s5 }
  0xcb   : > { %p1825_p6 = pnand %p1823_p1, %p1809_p4  ;;  %p1831_p3 = scmp.lt.s32.totalorder %s1829_s25, %s1822_s7 }
  0xcd   : > { %p1826_p8 = pneg %p1825_p6  ;;  %p1832_p7 = por %p1831_p3, %p1830_p10 }
  0xcf   : > { %p1833_p11 = pnand %p1832_p7, %p1826_p8 }
  0xd1   : > { %1836 = shalt.err (!%p1833_p11)
}
  0xd2   : > { %1516 = dma.hbm_to_vmem [thread:$0]  (!%p2456_p0), %s2452_s19, 128, %s2460_s4, %s368_s15  }
  0xd3   : > { %s1470_s11 = smul.u32 36, %s386_s3  ;;  %s1333_s12 = sshll.u32 %s2109_s20, 6 }
  0xd4   : > { %s2886_s5 = sld [smem:[#allocation47_spill]]  ;;  %s2506_s24 = scalar_lea.sflag [#allocation13], %s386_s3 }
  0xd5   : > { %s390_s27 = scalar_lea.vmem [#allocation12], %s1470_s11  ;;  %p1839_p8 = pneg %p2464_p5 }
  0xd6   : > { %s396_s25 = sshll.u32 %s390_s27, 4  ;;  %s2502_s25 = int_to_ptr.vmem [resolvable:$true] %s396_s25 }
  0xda   : > { %s2500_s7 = scalar_lea.hbm %s2886_s5, %s1333_s12  ;;  %s1842_s12 = scalar_lea.hbm %s2886_s5, 1152 }
  0xdb   : > { %s1837_s4 = scalar_lea.hbm %s2500_s7, 576  ;;  %p1843_p0 = scmp.lt.u32.totalorder %s2500_s7, %s2886_s5 }
  0xdc   : > { %p1838_p10 = scmp.ne.s32.totalorder %s2500_s7, %s1837_s4  ;;  %p1844_p4 = scmp.lt.u32.totalorder %s1842_s12, %s1837_s4 }
  0xdd   : > { %p1846_p12 = scmp.lt.u32.totalorder %s1837_s4, %s2500_s7 }
  0xde   : > { %p1840_p9 = pnand %p1839_p8, %p1838_p10  ;;  %p1845_p2 = por %p1844_p4, %p1843_p0 }
  0xe0   : > { %p1841_p13 = pneg %p1840_p9  ;;  %p1847_p1 = por %p1846_p12, %p1845_p2 }
  0xe2   : > { %p1848_p6 = pnand %p1847_p1, %p1841_p13 }
  0xe4   : > { %1851 = shalt.err (!%p1848_p6)
}
  0xe5   : > { %s1852_s3 = scalar_lea.vmem %s2502_s25, 576  ;;  %s2128_s0 = smov [#allocation12]  }
  0xe6   : > { %p1853_p3 = scmp.ne.s32.totalorder %s2502_s25, %s1852_s3  ;;  %s1857_s27 = sshll.u32 %s2128_s0, 4  ;;  %s1858_s27 = int_to_ptr.vmem [resolvable:$false] %s1857_s27 }
  0xe7   : > { %s1859_s19 = scalar_lea.vmem %s1858_s27, 1152  ;;  %p1860_p10 = scmp.lt.s32.totalorder %s2502_s25, %s1858_s27 }
  0xe8   : > { %p1855_p7 = pnand %p1853_p3, %p1839_p8  ;;  %p1861_p9 = scmp.lt.s32.totalorder %s1859_s19, %s1852_s3 }
  0xea   : > { %p1856_p11 = pneg %p1855_p7  ;;  %p1862_p0 = por %p1861_p9, %p1860_p10 }
  0xec   : > { %p1863_p4 = pnand %p1862_p0, %p1856_p11 }
  0xee   : > { %1866 = shalt.err (!%p1863_p4)
}
  0xef   : > { %s2887_s4 = smov 128   ;;  %s2888_s15 = sld [smem:[#allocation36_spill]] }
  0xf0   : > { %1519 = dma.hbm_to_vmem [thread:$0]  (!%p2464_p5), %s2500_s7, 576, %s2502_s25, %s2506_s24, %s2887_s4, %s2864_s9, %s2863_s1  }
  0xf5   : > { %p2889_p8 = scmp.ne.s32.totalorder %s2888_s15, 0 }
  0xf6   : > { %s410_s12 = sand.u32 (!%p2889_p8), 1, %s2093_s16   ;;  %p2890_p13 = scmp.ne.s32.totalorder (!%p2889_p8), %s2871_s6, 0 }
  0xf7   : > { %408 = sbr.rel (%p2889_p8) target bundleno = 1085 (0x43d), region = 44  ;;  %s2540_s26 = sshll.u32 (!%p2889_p8), %s410_s12, 3 }
  0xf8   : > { %s411_s11 = scalar_lea.sflag (!%p2889_p8), [#allocation4], %s410_s12  ;;  %s414_s3 = scalar_lea.vmem (!%p2889_p8), [#allocation3], %s2540_s26 }
  0xfe   : > { %2036 = dma.done.wait (%p2890_p13), %s411_s11, 128  }
  0xff   : > { %2038 = vsyncadd (%p2890_p13), %s411_s11, 4294967168  ;;  %p2891_p2 = scmp.eq.s32.totalorder %s2258_s23, 0 }
 0x101   : > { %2040 = dma.done.wait (%p2891_p2), [#allocation7], 2560   ;;  %p2892_p5 = pmov %p2891_p2 }
 0x102   : > { %p2893_p12 = pmov %p2891_p2 }
 0x103   : > { %2042 = vsyncadd (%p2892_p5), [#allocation7], 4294964736 }
 0x104   : > { %2044 = dma.done.wait (%p2893_p12), [#allocation10], 2048   ;;  %p2894_p1 = pmov %p2891_p2 }
 0x105   : > { %s435_s1 = sand.u32 1, %s2081_s13   ;;  %p2895_p6 = scmp.ne.s32.totalorder %s2878_s10, 0 }
 0x106   : > { %2046 = vsyncadd (%p2894_p1), [#allocation10], 4294965248  ;;  %s1471_s9 = smul.u32 36, %s435_s1  ;;  %s436_s24 = scalar_lea.sflag [#allocation13], %s435_s1 }
 0x108   : > { %s2556_s2 = scalar_lea.vmem [#allocation12], %s1471_s9 }
 0x109   : > { %2048 = dma.done.wait (%p2895_p6), %s436_s24, 576  }
 0x10a   : > { %2050 = vsyncadd (%p2895_p6), %s436_s24, 4294966720  ;;  %s2896_s6 = sld [smem:[#allocation28_spill]]  ;;  %s2897_s15 = sld [smem:[#allocation32_spill]] }
 0x110   : > { %s2563_s7 = sand.u32 1, %s2896_s6   ;;  %p1344_p3 = scmp.ne.s32.totalorder %s2897_s15, 0 }
 0x111   : > { %s1340_s25 = sshll.u32 %s2563_s7, 4  ;;  %v1669_v0 = vld [vmem:[#allocation6 + $0x40] sm:$0xff] (!%p1344_p3)   ;;  %v1671_v2 = vld [vmem:[#allocation6 + $0x48] sm:$0xff] (!%p1344_p3)   ;;  %v1673_v4 = vld [vmem:[#allocation6 + $0x50] sm:$0xff] (!%p1344_p3)   ;;  %vm750_vm0 = vcmask (!%p1344_p3), 31744   ;;  %v2129_v23 = vmov (!%p1344_p3), 0  }
 0x112   : > { %s2566_s0 = scalar_lea.vmem [#allocation14], %s1340_s25  ;;  %s2568_s27 = scalar_lea.vmem [#allocation15], %s1340_s25  ;;  %v1670_v1 = vld [vmem:[#allocation6] sm:$0xff] (!%p1344_p3)   ;;  %1393 = vmatprep.subr.bf16.mxu0 (!%p1344_p3), %v1669_v0  ;;  %v1672_v3 = vld [vmem:[#allocation6 + $0x8] sm:$0xff] (!%p1344_p3)   ;;  %v1674_v5 = vld [vmem:[#allocation6 + $0x10] sm:$0xff] (!%p1344_p3)   ;;  %1668 = vset.pattern.permute.xlu1 (!%p1344_p3), %v2129_v23  ;;  %vm763_vm1 = vcmask (!%p1344_p3), 1041408  }
 0x113   : > { %s2570_s19 = scalar_lea.vmem [#allocation17], %s1340_s25  ;;  %s2572_s4 = scalar_lea.vmem [#allocation18], %s1340_s25  ;;  %1394 = vmatpush3.bf16.msra.mxu0 (!%p1344_p3), %v1670_v1  ;;  %v1675_v6 = vld [vmem:[#allocation6 + $0x58] sm:$0xff] (!%p1344_p3)   ;;  %v1677_v8 = vld [vmem:[#allocation6 + $0x60] sm:$0xff] (!%p1344_p3)   ;;  %v1679_v10 = vld [vmem:[#allocation6 + $0x68] sm:$0xff] (!%p1344_p3)   ;;  %1667 = vset.pattern.permute.xlu0 (!%p1344_p3), %v2129_v23  ;;  %vm860_vm2 = vcmask (!%p1344_p3), 588800  }
 0x114   : > { %498 = sbr.rel (%p1344_p3) target bundleno = 759 (0x2f7), region = 72  ;;  %1395 = vmatprep.subr.bf16.mxu0 (!%p1344_p3), %v1671_v2  ;;  %v1676_v7 = vld [vmem:[#allocation6 + $0x18] sm:$0xff] (!%p1344_p3)   ;;  %v1678_v9 = vld [vmem:[#allocation6 + $0x20] sm:$0xff] (!%p1344_p3)   ;;  %v1680_v13 = vld [vmem:[#allocation6 + $0x28] sm:$0xff] (!%p1344_p3)  }
 0x115   : > { %v499_v11 = vld [vmem:[%s414_s3] sm:$0xff] (!%p1344_p3)  ;;  %v1686_v20 = vld [vmem:[#allocation8] sm:$0xff] (!%p1344_p3)   ;;  %v683_v25 = vld [vmem:[#allocation9 + $0x8] sm:$0xff] (!%p1344_p3) }
 0x116   : > { %v501_v12 = vcombine.high (!%p1344_p3), %v499_v11, %v499_v11  ;;  %v1681_v15 = vld [vmem:[#allocation6 + $0x70] sm:$0xff] (!%p1344_p3)   ;;  %v1683_v17 = vld [vmem:[#allocation6 + $0x78] sm:$0xff] (!%p1344_p3)   ;;  %v503_v19 = vpack.c.bf16 (!%p1344_p3), %v499_v11, %v499_v11  ;;  %1431 = vmatprep.mubr.msk.bf16.mxu1 (!%p1344_p3), %vm750_vm0, %v1686_v20  ;;  %v682_v22 = vld [vmem:[#allocation9] sm:$0xff] (!%p1344_p3) }
 0x117   : > { %1396 = vmatpush3.bf16.msra.mxu0 (!%p1344_p3), %v1672_v3  ;;  %v1682_v16 = vld [vmem:[#allocation6 + $0x30] sm:$0xff] (!%p1344_p3)   ;;  %v1684_v18 = vld [vmem:[#allocation6 + $0x38] sm:$0xff] (!%p1344_p3)   ;;  %692 = vperm.xlu0 (!%p1344_p3), %1667, %v682_v22   ;;  %v687_v26 = vld [vmem:[#allocation9 + $0x28] sm:$0xff] (!%p1344_p3) }
 0x118   : > { %1397 = vmatprep.subr.bf16.mxu0 (!%p1344_p3), %v1673_v4  ;;  %v504_v14 = vpack.c.bf16 (!%p1344_p3), %v501_v12, %v501_v12  ;;  %v684_v21 = vld [vmem:[#allocation9 + $0x10] sm:$0xff] (!%p1344_p3)  ;;  %v685_v24 = vld [vmem:[#allocation9 + $0x18] sm:$0xff] (!%p1344_p3)  ;;  %v686_v27 = vld [vmem:[#allocation9 + $0x20] sm:$0xff] (!%p1344_p3) }
 0x119   : > { %702 = vperm.xlu1 (!%p1344_p3), %1668, %v684_v21   ;;  %v689_v28 = vld [vmem:[#allocation9 + $0x38] sm:$0xff] (!%p1344_p3)  ;;  %v688_v29 = vld [vmem:[#allocation9 + $0x30] sm:$0xff] (!%p1344_p3)  ;;  %v1687_v37 = vld [vmem:[#allocation8 + $0x8] sm:$0xff] (!%p1344_p3)  }
 0x11a   : > { %665 = vmatprep.mubr.bf16.mxu0 (!%p1344_p3), %v504_v14  ;;  %v1688_v38 = vld [vmem:[#allocation8 + $0x10] sm:$0xff] (!%p1344_p3)   ;;  %v1689_v39 = vld [vmem:[#allocation8 + $0x18] sm:$0xff] (!%p1344_p3)   ;;  %v840_v58 = vld [vmem:[#allocation11] sm:$0xff] (!%p1344_p3) }
 0x11b   : > { %1398 = vmatpush3.bf16.msra.mxu0 %v1674_v5  ;;  %697 = vperm.xlu0 %1667, %v683_v25   ;;  %v842_v54 = vld [vmem:[#allocation11 + $0x10] sm:$0xff]  ;;  %v843_v56 = vld [vmem:[#allocation11 + $0x18] sm:$0xff]  ;;  %v841_v60 = vld [vmem:[#allocation11 + $0x8] sm:$0xff] }
 0x11c   : > { %1399 = vmatprep.subr.bf16.mxu0 %v1675_v6  ;;  %v846_v14 = vld [vmem:[#allocation11 + $0x30] sm:$0xff]  ;;  %v845_v20 = vld [vmem:[#allocation11 + $0x28] sm:$0xff] }
 0x11d   : > { %707 = vperm.xlu1 %1668, %v685_v24  }
 0x11f   : > { %1400 = vmatpush3.bf16.msra.mxu0 %v1676_v7  ;;  %712 = vperm.xlu0 %1667, %v686_v27  }
 0x120   : > { %1401 = vmatprep.subr.bf16.mxu0 %v1677_v8 }
 0x121   : > { %717 = vperm.xlu1 %1668, %v687_v26  }
 0x123   : > { %1402 = vmatpush3.bf16.msra.mxu0 %v1678_v9  ;;  %722 = vperm.xlu0 %1667, %v688_v29  }
 0x124   : > { %1403 = vmatprep.subr.bf16.mxu0 %v1679_v10 }
 0x125   : > { %727 = vperm.xlu1 %1668, %v689_v28  }
 0x127   : > { %1404 = vmatpush3.bf16.msra.mxu0 %v1680_v13 }
 0x128   : > { %1405 = vmatprep.subr.bf16.mxu0 %v1681_v15 }
 0x12b   : > { %1406 = vmatpush3.bf16.msra.mxu0 %v1682_v16  ;;  %v847_v16 = vld [vmem:[#allocation11 + $0x38] sm:$0xff] }
 0x12c   : > { %1407 = vmatprep.subr.bf16.mxu0 %v1683_v17 }
 0x12f   : > { %1408 = vmatpush3.bf16.msra.mxu0 %v1684_v18  ;;  %v844_v18 = vld [vmem:[#allocation11 + $0x20] sm:$0xff] }
 0x132   : > { %666 = vmatmul.mubr.bf16.vlgmr.msra.gmra.mrb[0].mxu0 %v503_v19 }
 0x196   : > { %v693_v40 = vpop.permute.xlu0 %692 }
 0x198   : > { %v703_v41 = vpop.permute.xlu1 %702 }
 0x19a   : > { %v698_v42 = vpop.permute.xlu0 %697 }
 0x19c   : > { %v708_v43 = vpop.permute.xlu1 %707 }
 0x19e   : > { %v713_v47 = vpop.permute.xlu0 %712 }
 0x1a0   : > { %v718_v53 = vpop.permute.xlu1 %717 }
 0x1a2   : > { %v723_v0 = vpop.permute.xlu0 %722 }
 0x1a4   : > { %v728_v7 = vpop.permute.xlu1 %727 }
 0x205   : > { %v1409_v30 = vpop.f32.mrb[0].mxu0 }
 0x206   : > { %v1410_v31 = vpop.f32.mrb[1].mxu0 }
 0x207   : > { %v1411_v32 = vadd.f32 %v1410_v31, %v1409_v30  ;;  %v1412_v33 = vpop.f32.mrb[2].mxu0 }
 0x208   : > { %v1413_v34 = vpop.f32.mrb[3].mxu0 }
 0x209   : > { %v681_v35 = vpack.c.bf16 %v1411_v32, %v1411_v32 }
 0x20b   : > { %1467 = vmatprep.subr.msk.bf16.mxu1 %vm763_vm1, %v681_v35  ;;  %v765_v36 = vsel %vm763_vm1, %v681_v35, 0 }
 0x20c   : > { %1430 = vmatpush3.bf16.msra.mxu1 %v765_v36 }
 0x20f   : > { %1432 = vmatmul.mubr.msk.bf16.vlgmr.msra.gmra.mrb[0].mxu1 %vm750_vm0, %v1687_v37 }
 0x210   : > { %1435 = vmatprep.mubr.msk.bf16.mxu1 %vm750_vm0, %v1688_v38 }
 0x217   : > { %1436 = vmatmul.mubr.msk.bf16.gmra.mrb[4].mxu1 %vm750_vm0, %v1689_v39 }
 0x2e2   : > { %v1433_v44 = vpop.f32.mrb[0].mxu1 }
 0x2e3   : > { %v810_v45 = vadd.f32 %v1433_v44, %v703_v41  ;;  %v801_v46 = vpop.f32.mrb[1].mxu1 }
 0x2e4   : > { %v802_v48 = vadd.f32 %v801_v46, %v693_v40  ;;  %v1434_v49 = vpop.f32.mrb[2].mxu1 }
 0x2e5   : > { %v834_v50 = vmax.f32 %v810_v45, 0.0  ;;  %v813_v51 = vadd.f32 %v1434_v49, %v708_v43  ;;  %v804_v52 = vpop.f32.mrb[3].mxu1 }
 0x2e6   : > { %v832_v55 = vmax.f32 %v802_v48, 0.0  ;;  %v805_v57 = vadd.f32 %v804_v52, %v698_v42 }
 0x2e7   : > { %v835_v59 = vmax.f32 %v813_v51, 0.0  ;;  %v850_v62 = vmul.f32 %v842_v54, %v834_v50 }
 0x2e8   : > { %v833_v61 = vmax.f32 %v805_v57, 0.0  ;;  %v848_v1 = vmul.f32 %v840_v58, %v832_v55 }
 0x2e9   : > { %v851_v63 = vmul.f32 %v843_v56, %v835_v59 }
 0x2ea   : > { %v849_v2 = vmul.f32 %v841_v60, %v833_v61  ;;  %v1437_v3 = vpop.f32.mrb[4].mxu1 }
 0x2eb   : > { %v857_v4 = vpack.c.bf16 %v851_v63, %v850_v62  ;;  %v826_v5 = vadd.f32 %v1437_v3, %v723_v0  ;;  %v817_v6 = vpop.f32.mrb[5].mxu1 }
 0x2ec   : > { %v856_v8 = vpack.c.bf16 %v849_v2, %v848_v1  ;;  %v818_v9 = vadd.f32 %v817_v6, %v713_v47  ;;  %v1438_v10 = vpop.f32.mrb[6].mxu1 }
 0x2ed   : > { %862 = vst.msk [vmem:[#allocation2 + $0x8] sm:$0xff] %vm860_vm2, %v857_v4  ;;  %v838_v11 = vmax.f32 %v826_v5, 0.0  ;;  %v829_v12 = vadd.f32 %v1438_v10, %v728_v7  ;;  %v820_v13 = vpop.f32.mrb[7].mxu1 }
 0x2ee   : > { %861 = vst.msk [vmem:[#allocation2] sm:$0xff] %vm860_vm2, %v856_v8  ;;  %v836_v15 = vmax.f32 %v818_v9, 0.0  ;;  %v821_v17 = vadd.f32 %v820_v13, %v718_v53 }
 0x2ef   : > { %v839_v19 = vmax.f32 %v829_v12, 0.0  ;;  %v854_v22 = vmul.f32 %v846_v14, %v838_v11 }
 0x2f0   : > { %v837_v21 = vmax.f32 %v821_v17, 0.0  ;;  %v852_v24 = vmul.f32 %v844_v18, %v836_v15 }
 0x2f1   : > { %v855_v23 = vmul.f32 %v847_v16, %v839_v19 }
 0x2f2   : > { %v853_v25 = vmul.f32 %v845_v20, %v837_v21 }
 0x2f3   : > { %v859_v26 = vpack.c.bf16 %v855_v23, %v854_v22 }
 0x2f4   : > { %v858_v27 = vpack.c.bf16 %v853_v25, %v852_v24 }
 0x2f5   : > { %864 = vst.msk [vmem:[#allocation2 + $0x18] sm:$0xff] %vm860_vm2, %v859_v26 }
 0x2f6   : > { %863 = vst.msk [vmem:[#allocation2 + $0x10] sm:$0xff] %vm860_vm2, %v858_v27 }
 0x2f7 PF: > { %v1690_v28 = vld [vmem:[%s2556_s2] sm:$0xff]   ;;  %v1691_v29 = vld [vmem:[%s2556_s2 + $0x8] sm:$0xff]   ;;  %vm905_vm3 = vcmask 588800   ;;  %v1692_v30 = vld [vmem:[%s2556_s2 + $0x10] sm:$0xff]   ;;  %s2898_s10 = sld [smem:[#allocation33_spill]]  ;;  %s2899_s12 = sld [smem:[#allocation32_spill]] }
 0x2f8   : > { %1439 = vmatprep.subr.bf16.mxu0 %v1690_v28  ;;  %1457 = vmatprep.subr.bf16.mxu1 %v1690_v28  ;;  %v865_v31 = vld [vmem:[#allocation2] sm:$0xff]  ;;  %v1693_v33 = vld [vmem:[%s2556_s2 + $0x18] sm:$0xff]   ;;  %v1694_v34 = vld [vmem:[%s2556_s2 + $0x20] ss:$0 sps:$4 sm:$0xff]   ;;  %vm918_vm4 = vcmask 1043456   ;;  %s1042_s9 = sshll.u32 %s2568_s27, 4  ;;  %s2603_s9 = int_to_ptr.vmem [resolvable:$true] %s1042_s9 }
 0x2f9   : > { %1440 = vmatpush3.bf16.msra.mxu0 %v1690_v28  ;;  %1462 = vmatpush3.bf16.msra.mxu1 %v1690_v28  ;;  %v920_v35 = vsel %vm918_vm4, %v1694_v34, 0  ;;  %v866_v36 = vld [vmem:[#allocation2 + $0x8] sm:$0xff]  ;;  %s2900_s6 = sld [smem:[#allocation49_spill]]  ;;  %s1025_s15 = sshll.u32 %s2566_s0, 4  ;;  %s2615_s15 = int_to_ptr.vmem [resolvable:$true] %s1025_s15 }
 0x2fa   : > { %1441 = vmatprep.subr.bf16.mxu0 %v1691_v29  ;;  %1458 = vmatprep.subr.bf16.mxu1 %v1691_v29  ;;  %s1059_s5 = sshll.u32 %s2570_s19, 4  ;;  %s1076_s3 = sshll.u32 %s2572_s4, 4  ;;  %s2624_s5 = int_to_ptr.vmem [resolvable:$true] %s1059_s5  ;;  %s2633_s3 = int_to_ptr.vmem [resolvable:$true] %s1076_s3 }
 0x2fb   : > { %1449 = vmatprep.mubr.msk.bf16.mxu0 %vm905_vm3, %v865_v31  ;;  %s2902_s21 = sld [smem:[#allocation50_spill]]  ;;  %s2904_s18 = sld [smem:[#allocation51_spill]] }
 0x2fc   : > { %v868_v37 = vld [vmem:[#allocation2 + $0x18] sm:$0xff]  ;;  %s1867_s17 = scalar_lea.vmem %s2603_s9, 256  ;;  %p2907_p11 = scmp.ne.s32.totalorder %s2881_s8, 0 }
 0x2fd   : > { %v867_v32 = vld [vmem:[#allocation2 + $0x10] sm:$0xff]  ;;  %1442 = vmatpush3.bf16.msra.mxu0 %v1691_v29  ;;  %1463 = vmatpush3.bf16.msra.mxu1 %v1691_v29  ;;  %s1382_s26 = sshll.u32 %s2898_s10, 2  ;;  %p1868_p7 = scmp.ne.s32.totalorder %s2603_s9, %s1867_s17 }
 0x2fe   : > { %1453 = vmatprep.mubr.msk.bf16.mxu1 %vm905_vm3, %v867_v32  ;;  %1443 = vmatprep.subr.bf16.mxu0 %v1692_v30  ;;  %s1022_s11 = sadd.s32 %s2899_s12, %s1382_s26  ;;  %s2901_s26 = sld [smem:[#allocation48_spill]] }
 0x2ff   : > { %1459 = vmatprep.subr.bf16.mxu1 %v1692_v30  ;;  %s1383_s1 = sshll.u32 %s1022_s11, 7  ;;  %p1869_p10 = pnand %p1868_p7, %p2907_p11 }
 0x300   : > { %s2601_s25 = scalar_lea.hbm %s2900_s6, %s1383_s1 }
 0x301   : > { %1444 = vmatpush3.bf16.msra.mxu0 %v1692_v30  ;;  %1464 = vmatpush3.bf16.msra.mxu1 %v1692_v30  ;;  %s2903_s29 = smov %s2902_s21  ;;  %s2620_s20 = scalar_lea.hbm %s2902_s21, %s1383_s1 }
 0x302   : > { %1445 = vmatprep.subr.bf16.mxu0 %v1693_v33  ;;  %1460 = vmatprep.subr.bf16.mxu1 %v1693_v33  ;;  %s2905_s28 = smov %s2904_s18  ;;  %s2631_s24 = scalar_lea.hbm %s2904_s18, %s1383_s1 }
 0x303   : > { %s2906_s21 = sand.u32 1, %s2258_s23   ;;  %p1870_p9 = pneg %p1869_p10 }
 0x304   : > { %s2610_s11 = scalar_lea.hbm %s2901_s26, %s1383_s1  ;;  %s2639_s2 = scalar_lea.sflag [#allocation16], %s2906_s21 }
 0x305   : > { %1446 = vmatpush3.bf16.msra.mxu0 %v1693_v33  ;;  %1465 = vmatpush3.bf16.msra.mxu1 %v1693_v33 }
 0x306   : > { %1468 = vmatprep.subr.msk.bf16.mxu0 %vm918_vm4, %v1694_v34  ;;  %1469 = vmatprep.subr.msk.bf16.mxu1 %vm918_vm4, %v1694_v34 }
 0x309   : > { %1448 = vmatpush3.bf16.msra.mxu0 %v920_v35  ;;  %1466 = vmatpush3.bf16.msra.mxu1 %v920_v35 }
 0x30c   : > { %1450 = vmatmul.mubr.msk.bf16.vlgmr.msra.gmra.mrb[0].mxu0 %vm905_vm3, %v866_v36  ;;  %1454 = vmatmul.mubr.msk.bf16.vlgmr.msra.gmra.mrb[0].mxu1 %vm905_vm3, %v868_v37 }
 0x3df   : > { %v1451_v38 = vpop.f32.mrb[0].mxu0  ;;  %v1455_v39 = vpop.f32.mrb[0].mxu1 }
 0x3e0   : > { %989 = vst [vmem:[%s2568_s27] sm:$0xff] %v1451_v38  ;;  %993 = vst [vmem:[%s2572_s4] sm:$0xff] %v1455_v39  ;;  %v956_v40 = vpop.f32.mrb[1].mxu0  ;;  %v972_v41 = vpop.f32.mrb[1].mxu1 }
 0x3e1   : > { %987 = vst [vmem:[%s2566_s0] sm:$0xff] %v956_v40  ;;  %991 = vst [vmem:[%s2570_s19] sm:$0xff] %v972_v41  ;;  %v1452_v42 = vpop.f32.mrb[2].mxu0  ;;  %v1456_v43 = vpop.f32.mrb[2].mxu1 }
 0x3e2   : > { %990 = vst [vmem:[%s2568_s27 + $0x8] sm:$0xff] %v1452_v42  ;;  %994 = vst [vmem:[%s2572_s4 + $0x8] sm:$0xff] %v1456_v43  ;;  %v959_v44 = vpop.f32.mrb[3].mxu0  ;;  %v975_v45 = vpop.f32.mrb[3].mxu1  ;;  %s2130_s27 = smov [#allocation15]  }
 0x3e3   : > { %988 = vst [vmem:[%s2566_s0 + $0x8] sm:$0xff] %v959_v44  ;;  %992 = vst [vmem:[%s2570_s19 + $0x8] sm:$0xff] %v975_v45  ;;  %s1871_s4 = sshll.u32 %s2130_s27, 4  ;;  %s1872_s4 = int_to_ptr.vmem [resolvable:$false] %s1871_s4 }
 0x3e4   : > { %s1873_s16 = scalar_lea.vmem %s1872_s4, 512  ;;  %p1874_p0 = scmp.lt.s32.totalorder %s2603_s9, %s1872_s4 }
 0x3e5   : > { %p1875_p4 = scmp.lt.s32.totalorder %s1873_s16, %s1867_s17 }
 0x3e7   : > { %p1876_p8 = por %p1875_p4, %p1874_p0 }
 0x3e9   : > { %p1877_p13 = pnand %p1876_p8, %p1870_p9 }
 0x3eb   : > { %1880 = shalt.err (!%p1877_p13)
}
 0x3ec   : > { %s1881_s23 = scalar_lea.hbm %s2601_s25, 256  ;;  %s1885_s19 = scalar_lea.hbm %s2900_s6, 1024 }
 0x3ed   : > { %p1882_p2 = scmp.ne.s32.totalorder %s2601_s25, %s1881_s23  ;;  %p1886_p1 = scmp.lt.u32.totalorder %s2601_s25, %s2900_s6 }
 0x3ee   : > { %p1887_p6 = scmp.lt.u32.totalorder %s1885_s19, %s1881_s23  ;;  %p1889_p7 = scmp.lt.u32.totalorder %s1881_s23, %s2601_s25 }
 0x3ef   : > { %p1883_p5 = pnand %p1882_p2, %p2907_p11 }
 0x3f0   : > { %p1888_p3 = por %p1887_p6, %p1886_p1 }
 0x3f1   : > { %p1884_p12 = pneg %p1883_p5 }
 0x3f2   : > { %p1890_p10 = por %p1889_p7, %p1888_p3 }
 0x3f4   : > { %p1891_p9 = pnand %p1890_p10, %p1884_p12 }
 0x3f6   : > { %1894 = shalt.err (!%p1891_p9)
}
 0x3f7   : > { %s2131_s16 = smov 128   ;;  %s2132_s17 = smov 256  }
 0x3f8   : > { %s2133_s12 = smov 8   ;;  %s996_s21 = scalar_lea.sflag [#allocation5], %s2563_s7 }
 0x3f9   : > { %1493 = dma.vmem_to_hbm [thread:$0]  (%p2907_p11), %s2603_s9, 256, %s2601_s25, %s2639_s2, %s2131_s16, %s2132_s17, %s2133_s12  }
 0x3fa   : > { %s1895_s27 = scalar_lea.vmem %s2615_s15, 256  ;;  %s2134_s4 = smov [#allocation14]  }
 0x3fb   : > { %p1896_p0 = scmp.ne.s32.totalorder %s2615_s15, %s1895_s27  ;;  %s1899_s23 = sshll.u32 %s2134_s4, 4  ;;  %s1900_s23 = int_to_ptr.vmem [resolvable:$false] %s1899_s23 }
 0x3fc   : > { %s1901_s18 = scalar_lea.vmem %s1900_s23, 512  ;;  %p1902_p13 = scmp.lt.s32.totalorder %s2615_s15, %s1900_s23 }
 0x3fd   : > { %p1897_p4 = pnand %p1896_p0, %p2907_p11  ;;  %p1903_p2 = scmp.lt.s32.totalorder %s1901_s18, %s1895_s27 }
 0x3ff   : > { %p1898_p8 = pneg %p1897_p4  ;;  %p1904_p5 = por %p1903_p2, %p1902_p13 }
 0x401   : > { %p1905_p12 = pnand %p1904_p5, %p1898_p8 }
 0x403   : > { %1908 = shalt.err (!%p1905_p12)
}
 0x404   : > { %s1909_s9 = scalar_lea.hbm %s2610_s11, 256  ;;  %s1913_s19 = scalar_lea.hbm %s2901_s26, 1024 }
 0x405   : > { %p1910_p1 = scmp.ne.s32.totalorder %s2610_s11, %s1909_s9  ;;  %p1914_p7 = scmp.lt.u32.totalorder %s2610_s11, %s2901_s26 }
 0x406   : > { %p1915_p10 = scmp.lt.u32.totalorder %s1913_s19, %s1909_s9  ;;  %p1917_p0 = scmp.lt.u32.totalorder %s1909_s9, %s2610_s11 }
 0x407   : > { %p1911_p6 = pnand %p1910_p1, %p2907_p11 }
 0x408   : > { %p1916_p9 = por %p1915_p10, %p1914_p7 }
 0x409   : > { %p1912_p3 = pneg %p1911_p6 }
 0x40a   : > { %p1918_p4 = por %p1917_p0, %p1916_p9 }
 0x40c   : > { %p1919_p8 = pnand %p1918_p4, %p1912_p3 }
 0x40e   : > { %1922 = shalt.err (!%p1919_p8)
}
 0x40f   : > { %1492 = dma.vmem_to_hbm [thread:$0]  (%p2907_p11), %s2615_s15, 256, %s2610_s11, %s996_s21, %s2131_s16, %s2132_s17, %s2133_s12  }
 0x410   : > { %s1923_s27 = scalar_lea.vmem %s2624_s5, 256  ;;  %s2135_s4 = smov [#allocation17]  }
 0x411   : > { %p1924_p13 = scmp.ne.s32.totalorder %s2624_s5, %s1923_s27  ;;  %s1927_s23 = sshll.u32 %s2135_s4, 4  ;;  %s1928_s23 = int_to_ptr.vmem [resolvable:$false] %s1927_s23 }
 0x412   : > { %s1929_s18 = scalar_lea.vmem %s1928_s23, 512  ;;  %p1930_p12 = scmp.lt.s32.totalorder %s2624_s5, %s1928_s23 }
 0x413   : > { %p1925_p2 = pnand %p1924_p13, %p2907_p11  ;;  %p1931_p1 = scmp.lt.s32.totalorder %s1929_s18, %s1923_s27 }
 0x415   : > { %p1926_p5 = pneg %p1925_p2  ;;  %p1932_p6 = por %p1931_p1, %p1930_p12 }
 0x417   : > { %p1933_p3 = pnand %p1932_p6, %p1926_p5 }
 0x419   : > { %1936 = shalt.err (!%p1933_p3)
}
 0x41a   : > { %s1937_s15 = scalar_lea.hbm %s2620_s20, 256  ;;  %s1941_s9 = scalar_lea.hbm %s2903_s29, 1024 }
 0x41b   : > { %p1938_p7 = scmp.ne.s32.totalorder %s2620_s20, %s1937_s15  ;;  %p1942_p0 = scmp.lt.u32.totalorder %s2620_s20, %s2903_s29 }
 0x41c   : > { %p1943_p4 = scmp.lt.u32.totalorder %s1941_s9, %s1937_s15  ;;  %p1945_p13 = scmp.lt.u32.totalorder %s1937_s15, %s2620_s20 }
 0x41d   : > { %p1939_p10 = pnand %p1938_p7, %p2907_p11 }
 0x41e   : > { %p1944_p8 = por %p1943_p4, %p1942_p0 }
 0x41f   : > { %p1940_p9 = pneg %p1939_p10 }
 0x420   : > { %p1946_p2 = por %p1945_p13, %p1944_p8 }
 0x422   : > { %p1947_p5 = pnand %p1946_p2, %p1940_p9 }
 0x424   : > { %1950 = shalt.err (!%p1947_p5)
}
 0x425   : > { %1494 = dma.vmem_to_hbm [thread:$0]  (%p2907_p11), %s2624_s5, 256, %s2620_s20, %s2639_s2, %s2131_s16, %s2132_s17, %s2133_s12  }
 0x426   : > { %s1011_s19 = scalar_lea.sflag [#allocation19], %s2563_s7  ;;  %s1951_s1 = scalar_lea.vmem %s2633_s3, 256 }
 0x427   : > { %p1952_p12 = scmp.ne.s32.totalorder %s2633_s3, %s1951_s1  ;;  %s2136_s10 = smov [#allocation18]  }
 0x428   : > { %s1955_s27 = sshll.u32 %s2136_s10, 4  ;;  %s1956_s27 = int_to_ptr.vmem [resolvable:$false] %s1955_s27 }
 0x429   : > { %p1953_p1 = pnand %p1952_p12, %p2907_p11  ;;  %s1957_s4 = scalar_lea.vmem %s1956_s27, 512 }
 0x42a   : > { %p1958_p3 = scmp.lt.s32.totalorder %s2633_s3, %s1956_s27  ;;  %p1959_p7 = scmp.lt.s32.totalorder %s1957_s4, %s1951_s1 }
 0x42b   : > { %p1954_p6 = pneg %p1953_p1 }
 0x42c   : > { %p1960_p10 = por %p1959_p7, %p1958_p3 }
 0x42e   : > { %p1961_p9 = pnand %p1960_p10, %p1954_p6 }
 0x430   : > { %1964 = shalt.err (!%p1961_p9)
}
 0x431   : > { %s1965_s20 = scalar_lea.hbm %s2631_s24, 256  ;;  %s1969_s23 = scalar_lea.hbm %s2905_s28, 1024 }
 0x432   : > { %p1966_p0 = scmp.ne.s32.totalorder %s2631_s24, %s1965_s20  ;;  %p1970_p13 = scmp.lt.u32.totalorder %s2631_s24, %s2905_s28 }
 0x433   : > { %p1971_p2 = scmp.lt.u32.totalorder %s1969_s23, %s1965_s20  ;;  %p1973_p12 = scmp.lt.u32.totalorder %s1965_s20, %s2631_s24 }
 0x434   : > { %p1967_p4 = pnand %p1966_p0, %p2907_p11 }
 0x435   : > { %p1972_p5 = por %p1971_p2, %p1970_p13 }
 0x436   : > { %p1968_p8 = pneg %p1967_p4 }
 0x437   : > { %p1974_p1 = por %p1973_p12, %p1972_p5 }
 0x439   : > { %p1975_p6 = pnand %p1974_p1, %p1968_p8 }
 0x43b   : > { %1978 = shalt.err (!%p1975_p6)
}
 0x43c   : > { %1495 = dma.vmem_to_hbm [thread:$0]  (%p2907_p11), %s2633_s3, 256, %s2631_s24, %s1011_s19, %s2131_s16, %s2132_s17, %s2133_s12  }
 0x43d PF: > { %s2908_s11 = sld [smem:[#allocation27_spill]]  ;;  %p1542_p3 = scmp.ge.s32.totalorder %s2117_s22, 2 }
 0x43e   : > { %p2909_p7 = scmp.ne.s32.totalorder %s2882_s30, 0 }
 0x440   : > { %p1521_p10 = pnand %p1542_p3, %p2909_p7 }
 0x443   : > { %s1091_s21 = sand.u32 1, %s2908_s11  }
 0x444   : > { %s1092_s9 = scalar_lea.sflag [#allocation5], %s1091_s21 }
 0x445   : > { %2052 = dma.done.wait (!%p1521_p10), %s1092_s9, 256  }
 0x446   : > { %2054 = vsyncadd (!%p1521_p10), %s1092_s9, 4294967040  ;;  %s2910_s8 = sadd.s32 4294967294, %s2117_s22  }
 0x447   : > { %s1100_s25 = sand.u32 1, %s2910_s8  }
 0x448   : > { %s1101_s0 = scalar_lea.sflag [#allocation16], %s1100_s25 }
 0x449   : > { %2056 = dma.done.wait (!%p1521_p10), %s1101_s0, 512  }
 0x44a   : > { %2058 = vsyncadd (!%p1521_p10), %s1101_s0, 4294966784  ;;  %s1119_s7 = scalar_lea.sflag [#allocation19], %s1091_s21 }
 0x44b   : > { %2060 = dma.done.wait (!%p1521_p10), %s1119_s7, 256  }
 0x44c   : > { %2062 = vsyncadd (!%p1521_p10), %s1119_s7, 4294967040  ;;  %s37_s22 = sadd.s32 1, %s2117_s22   ;;  %s2912_s30 = sld [smem:[#allocation28_spill]] }
 0x44d   : > { %p2752_p11 = scmp.ge.s32.totalorder %s37_s22, 6   ;;  %s2913_s10 = sld [smem:[#allocation29_spill]] }
 0x44e   : > { %s2914_s11 = sld [smem:[#allocation41_spill]]  ;;  %s2915_s24 = sld [smem:[#allocation39_spill]] }
 0x44f   : > { %s2916_s15 = sld [smem:[#allocation30_spill]]  ;;  %s2917_s16 = sld [smem:[#allocation31_spill]] }
 0x450   : > { %s2918_s17 = sld [smem:[#allocation40_spill]]  ;;  %s2919_s18 = sld [smem:[#allocation34_spill]] }
 0x451   : > { %s2920_s19 = sld [smem:[#allocation35_spill]]  ;;  %s2921_s20 = sld [smem:[#allocation37_spill]] }
 0x452   : > { %s2922_s21 = sld [smem:[#allocation38_spill]]  ;;  %s2923_s12 = smov %s2081_s13 }
 0x453   : > { %s2924_s13 = smov %s2085_s14  ;;  %36 = sbr.rel (!%p2752_p11) target bundleno = 29 (0x1d), region = 171 }
 0x454   : > { %s2925_s14 = smov %s2915_s24 }
 0x45a   :  { %1124 = vsyncpa [#allocation4], 1 }
 0x45b   :  { %1126 = vsyncpa [#allocation4 + $0x1], 1 }
 0x45c   :  { %1127 = vsyncpa [#allocation7], 1 }
 0x45d   :  { %1128 = vsyncpa [#allocation10], 1 }
 0x45e   :  { %1129 = vsyncpa [#allocation13], 1 }
 0x45f   :  { %1131 = vsyncpa [#allocation13 + $0x1], 1 }
 0x460   :  { %1132 = vsyncpa [#allocation5], 1 }
 0x461   :  { %1134 = vsyncpa [#allocation5 + $0x1], 1 }
 0x462   :  { %1135 = vsyncpa [#allocation16], 1 }
 0x463   :  { %1137 = vsyncpa [#allocation16 + $0x1], 1 }
 0x464   :  { %1138 = vsyncpa [#allocation19], 1 }
 0x465   :  { %1140 = vsyncpa [#allocation19 + $0x1], 1 }

</bundles_post_ra>
